<compile_context>
chip_gen: v7x
topology: tpu7x:2x2x1
jax: 0.10.0
libtpu: 0.0.40
codegen_flags: <defaults>
</compile_context>

<pallas_src>
import functools
import math

import jax
import jax.numpy as jnp
from jax.experimental import pallas as pl
from jax.experimental.pallas import tpu as pltpu


# ---------------------------------------------------------------------------
# Kernels
# ---------------------------------------------------------------------------
def _primary_kernel(x_ref, w_ref, b_ref, o_ref, *, relu):
    # x_ref: (Cin, HW_BLK)   one batch's spatial block, channels on sublanes
    # w_ref: (C1, Cin)       BN-folded 1x1 conv weight (resident)
    # b_ref: (C1, 1)         BN-folded bias (resident)
    # o_ref: (C1, HW_BLK)    lane-dense (spatial last) output block
    y = jnp.dot(w_ref[...], x_ref[...], preferred_element_type=jnp.float32)
    y = y + b_ref[...]
    if relu:
        y = jnp.maximum(y, 0.0)
    o_ref[...] = y.astype(o_ref.dtype)


def _cheap_kernel(xp_ref, k_ref, b_ref, o_ref, *, taps, wp, relu):
    # xp_ref: (CB, LIN)   zero-padded spatial plane, flattened row-major (row
    #                     stride = wp); tail-padded so every tap stays in range
    # k_ref : (CB, K*K)   BN-folded depthwise weights (resident)
    # b_ref : (CB, 1)     BN-folded bias (resident)
    # o_ref : (CB, LOUT)  output in padded-row layout (LOUT = H * wp); the
    #                     wrapper strips the pad columns.
    # Each tap (dh, dw) is a contiguous shifted slice of xp_ref -- we never hold
    # a full upcast copy of the tile, only the current slice.
    length = o_ref.shape[-1]
    acc = k_ref[:, 0:1] * xp_ref[:, 0:length].astype(jnp.float32)
    for t in range(1, len(taps)):
        dh, dw = taps[t]
        off = dh * wp + dw
        acc = acc + k_ref[:, t:t + 1] * xp_ref[:, off:off + length].astype(jnp.float32)
    y = acc + b_ref[...]
    if relu:
        y = jnp.maximum(y, 0.0)
    o_ref[...] = y.astype(o_ref.dtype)


# ---------------------------------------------------------------------------
# Helpers
# ---------------------------------------------------------------------------
def _fold_bn(w, gamma, beta, mean, var, eps=1e-5):
    """Fold inference BatchNorm into a (bias-free) conv weight."""
    scale = gamma / jnp.sqrt(var + eps)                       # (Cout,)
    w_eff = w * scale.reshape((-1,) + (1,) * (w.ndim - 1))
    b_eff = beta - mean * scale
    return w_eff, b_eff


def _pick_block(n, cap, align):
    """Largest divisor of n that is <= cap and a multiple of `align`; else n."""
    if n <= cap:
        return n
    for b in range(cap, 0, -1):
        if n % b == 0 and b % align == 0:
            return b
    return n


# ---------------------------------------------------------------------------
# GhostModule forward (Pallas)
# ---------------------------------------------------------------------------
def ghost_module(x, params, *, oup, ratio=2, dw_size=3, kernel_size=1,
                 stride=1, relu=True, eps=1e-5):
    if kernel_size != 1 or stride != 1:
        # TODO(synk): general primary conv (kernel_size > 1 / stride > 1).
        raise NotImplementedError("only kernel_size=1, stride=1 supported")

    B, cin, H, W = x.shape
    HW = H * W
    c1 = params["w_primary"].shape[0]          # init_channels

    # ---------------- stage 1: 1x1 conv + BN + ReLU (MXU) ----------------
    w1, b1 = _fold_bn(params["w_primary"].reshape(c1, cin),
                      params["bn1_gamma"], params["bn1_beta"],
                      params["bn1_mean"], params["bn1_var"], eps)
    w1 = w1.astype(jnp.float32)
    b1 = b1.reshape(c1, 1).astype(jnp.float32)

    x3 = x.reshape(B, cin, HW)                 # NC(HW): spatial on lanes
    hw_blk = _pick_block(HW, cap=1024, align=128)
    n_hw = HW // hw_blk

    x1_flat = pl.pallas_call(
        functools.partial(_primary_kernel, relu=relu),
        out_shape=jax.ShapeDtypeStruct((B, c1, HW), x.dtype),
        grid=(B, n_hw),
        in_specs=[
            pl.BlockSpec((None, cin, hw_blk), lambda b, j: (b, 0, j)),
            pl.BlockSpec((c1, cin), lambda b, j: (0, 0)),       # resident
            pl.BlockSpec((c1, 1), lambda b, j: (0, 0)),         # resident
        ],
        out_specs=pl.BlockSpec((None, c1, hw_blk), lambda b, j: (b, 0, j)),
        compiler_params=pltpu.CompilerParams(
            dimension_semantics=("parallel", "parallel")),
        cost_estimate=pl.CostEstimate(
            flops=int(2 * B * HW * cin * c1), transcendentals=0,
            bytes_accessed=int(4 * (B * cin * HW + B * c1 * HW + c1 * cin + c1))),
    )(x3, w1, b1)
    x1 = x1_flat.reshape(B, c1, H, W)

    n2 = oup - c1                               # "cheap" channels actually kept
    if n2 <= 0:
        return x1[:, :oup]

    # -------- stage 2: depthwise KxK conv + BN + ReLU (shifted slices) --------
    K = dw_size
    p = K // 2
    Hp, Wp = H + 2 * p, W + 2 * p
    LOUT = H * Wp                               # output in padded-row layout
    LIN = Hp * Wp + Wp                          # tail pad keeps all taps in range

    w2_full, b2_full = _fold_bn(params["w_dw"].reshape(-1, K * K),
                                params["bn2_gamma"], params["bn2_beta"],
                                params["bn2_mean"], params["bn2_var"], eps)
    w2 = w2_full[:n2].astype(jnp.float32)
    b2 = b2_full[:n2].reshape(n2, 1).astype(jnp.float32)

    # Source x1 channel of each kept cheap channel (identity for ratio=2).
    if ratio == 2:
        x1_src = x1[:, :n2]
    else:
        src = jnp.arange(n2) // (ratio - 1)
        x1_src = jnp.take(x1, src, axis=1)

    xp = jnp.pad(x1_src, ((0, 0), (0, 0), (p, p), (p, p))).reshape(B, n2, Hp * Wp)
    xp = jnp.pad(xp, ((0, 0), (0, 0), (0, Wp)))

    c_blk = _pick_block(n2, cap=256, align=8)
    n_cb = n2 // c_blk
    taps = tuple((dh, dw) for dh in range(K) for dw in range(K))

    y2 = pl.pallas_call(
        functools.partial(_cheap_kernel, taps=taps, wp=Wp, relu=relu),
        out_shape=jax.ShapeDtypeStruct((B, n2, LOUT), x.dtype),
        grid=(B, n_cb),
        in_specs=[
            pl.BlockSpec((None, c_blk, LIN), lambda b, c: (b, c, 0)),
            pl.BlockSpec((c_blk, K * K), lambda b, c: (c, 0)),   # resident
            pl.BlockSpec((c_blk, 1), lambda b, c: (c, 0)),       # resident
        ],
        out_specs=pl.BlockSpec((None, c_blk, LOUT), lambda b, c: (b, c, 0)),
        compiler_params=pltpu.CompilerParams(
            dimension_semantics=("parallel", "parallel")),
        cost_estimate=pl.CostEstimate(
            flops=int(2 * B * n2 * LOUT * K * K), transcendentals=0,
            bytes_accessed=int(4 * (B * n2 * LIN + B * n2 * LOUT + n2 * K * K + n2))),
    )(xp, w2, b2)

    x2 = y2.reshape(B, n2, H, Wp)[:, :, :, :W]   # strip pad columns
    return jnp.concatenate([x1, x2], axis=1)     # = cat([x1, x2])[:, :oup]


# ---------------------------------------------------------------------------
# Pure-JAX reference (mirrors the PyTorch forward, BN in eval mode)
# ---------------------------------------------------------------------------
def ghost_module_ref(x, params, *, oup, ratio=2, dw_size=3, relu=True, eps=1e-5):
    c1 = params["w_primary"].shape[0]

    def bn(y, g, b, m, v):
        g, b, m, v = (t[None, :, None, None] for t in (g, b, m, v))
        return (y - m) / jnp.sqrt(v + eps) * g + b

    x1 = jax.lax.conv_general_dilated(
        x, params["w_primary"], (1, 1), "VALID",
        dimension_numbers=("NCHW", "OIHW", "NCHW"))
    x1 = bn(x1, params["bn1_gamma"], params["bn1_beta"],
            params["bn1_mean"], params["bn1_var"])
    if relu:
        x1 = jnp.maximum(x1, 0.0)

    p = dw_size // 2
    x2 = jax.lax.conv_general_dilated(
        x1, params["w_dw"], (1, 1), ((p, p), (p, p)),
        dimension_numbers=("NCHW", "OIHW", "NCHW"), feature_group_count=c1)
    x2 = bn(x2, params["bn2_gamma"], params["bn2_beta"],
            params["bn2_mean"], params["bn2_var"])
    if relu:
        x2 = jnp.maximum(x2, 0.0)
    return jnp.concatenate([x1, x2], axis=1)[:, :oup]


def init_ghost_params(key, inp, oup, ratio=2, dw_size=3, kernel_size=1):
    init_ch = math.ceil(oup / ratio)
    new_ch = init_ch * (ratio - 1)
    ks = jax.random.split(key, 10)
    f32 = jnp.float32
    return dict(
        w_primary=jax.random.normal(ks[0], (init_ch, inp, kernel_size, kernel_size), f32)
        * (1.0 / math.sqrt(inp * kernel_size * kernel_size)),
        bn1_gamma=jax.random.uniform(ks[1], (init_ch,), f32, 0.5, 1.5),
        bn1_beta=jax.random.normal(ks[2], (init_ch,), f32) * 0.1,
        bn1_mean=jax.random.normal(ks[3], (init_ch,), f32) * 0.1,
        bn1_var=jax.random.uniform(ks[4], (init_ch,), f32, 0.5, 1.5),
        w_dw=jax.random.normal(ks[5], (new_ch, 1, dw_size, dw_size), f32)
        * (1.0 / math.sqrt(dw_size * dw_size)),
        bn2_gamma=jax.random.uniform(ks[6], (new_ch,), f32, 0.5, 1.5),
        bn2_beta=jax.random.normal(ks[7], (new_ch,), f32) * 0.1,
        bn2_mean=jax.random.normal(ks[8], (new_ch,), f32) * 0.1,
        bn2_var=jax.random.uniform(ks[9], (new_ch,), f32, 0.5, 1.5),
    )


if __name__ == "__main__":
    key = jax.random.PRNGKey(0)
    kp, kx = jax.random.split(key)

    B, inp, H, W = 2, 4, 16, 16
    oup, ratio, dw_size = 8, 2, 3

    params = init_ghost_params(kp, inp, oup, ratio=ratio, dw_size=dw_size)
    x = jax.random.normal(kx, (B, inp, H, W), jnp.float32)

    out = ghost_module(x, params, oup=oup, ratio=ratio, dw_size=dw_size)
    out = jax.block_until_ready(out)

    ref = ghost_module_ref(x, params, oup=oup, ratio=ratio, dw_size=dw_size)
    assert out.shape == (B, oup, H, W), out.shape
    assert jnp.allclose(out, ref, atol=1e-4, rtol=1e-4), "mismatch vs reference"

    print("KERNEL_OK")
</pallas_src>

<mosaic_0001>
module attributes {stable_mosaic.version = 11 : i64} {
  func.func @_primary_kernel(%arg0: i32, %arg1: i32, %arg2: memref<1x4x256xf32, #tpu.memory_space<vmem>>, %arg3: memref<4x4xf32, #tpu.memory_space<vmem>>, %arg4: memref<4x1xf32, #tpu.memory_space<vmem>>, %arg5: memref<1x4x256xf32, #tpu.memory_space<vmem>>) attributes {dimension_semantics = [#tpu.dimension_semantics<parallel>, #tpu.dimension_semantics<parallel>], iteration_bounds = array<i64: 2, 1>, scalar_prefetch = 0 : i64, scratch_operands = 0 : i64, tpu.core_type = #tpu.core_type<tc>, window_params = [{transform_indices = @transform_0, window_bounds = array<i64: 1, 4, 256>}, {pipeline_mode = #tpu.pipeline_mode<synchronous>, transform_indices = @transform_1, window_bounds = array<i64: 4, 4>}, {pipeline_mode = #tpu.pipeline_mode<synchronous>, transform_indices = @transform_2, window_bounds = array<i64: 4, 1>}, {transform_indices = @transform_3, window_bounds = array<i64: 1, 4, 256>}]} {
    %c0 = arith.constant 0 : index
    %c0_0 = arith.constant 0 : index
    %0 = vector.load %arg3[%c0, %c0_0] : memref<4x4xf32, #tpu.memory_space<vmem>>, vector<4x4xf32>
    %c0_1 = arith.constant 0 : index
    %c0_2 = arith.constant 0 : index
    %c0_3 = arith.constant 0 : index
    %1 = vector.load %arg2[%c0_1, %c0_2, %c0_3] : memref<1x4x256xf32, #tpu.memory_space<vmem>>, vector<1x4x256xf32>
    %2 = vector.shape_cast %1 : vector<1x4x256xf32> to vector<4x256xf32>
    %cst = arith.constant dense<0.000000e+00> : vector<4x256xf32>
    %3 = tpu.matmul %0, %2, %cst {dimension_numbers = #tpu.dot_dimension_numbers<[1], [0], [0], [1], [0, 0, 1, 1], [], []>} : vector<4x4xf32>, vector<4x256xf32>, vector<4x256xf32> -> vector<4x256xf32>
    %c0_4 = arith.constant 0 : index
    %c0_5 = arith.constant 0 : index
    %4 = vector.load %arg4[%c0_4, %c0_5] : memref<4x1xf32, #tpu.memory_space<vmem>>, vector<4x1xf32>
    %5 = vector.broadcast %4 : vector<4x1xf32> to vector<4x256xf32>
    %6 = arith.addf %3, %5 : vector<4x256xf32>
    %cst_6 = arith.constant 0.000000e+00 : f32
    %7 = vector.broadcast %cst_6 : f32 to vector<4x256xf32>
    %8 = arith.maximumf %6, %7 : vector<4x256xf32>
    %c0_7 = arith.constant 0 : index
    %c0_8 = arith.constant 0 : index
    %c0_9 = arith.constant 0 : index
    %9 = vector.load %arg5[%c0_7, %c0_8, %c0_9] : memref<1x4x256xf32, #tpu.memory_space<vmem>>, vector<1x4x256xf32>
    %10 = vector.shape_cast %9 : vector<1x4x256xf32> to vector<4x256xf32>
    %11 = vector.shape_cast %8 : vector<4x256xf32> to vector<1x4x256xf32>
    tpu.vector_store %arg5[%c0_7, %c0_8, %c0_9], %11 {strides = array<i32>} : memref<1x4x256xf32, #tpu.memory_space<vmem>>, vector<1x4x256xf32>,
    return
  }
  func.func @transform_0(%arg0: i32, %arg1: i32) -> (i32, i32, i32) {
    %c0_i32 = arith.constant 0 : i32
    %c0_i32_0 = arith.constant 0 : i32
    return %arg0, %c0_i32, %arg1 : i32, i32, i32
  }
  func.func @transform_1(%arg0: i32, %arg1: i32) -> (i32, i32) {
    %c0_i32 = arith.constant 0 : i32
    %c0_i32_0 = arith.constant 0 : i32
    %c0_i32_1 = arith.constant 0 : i32
    return %c0_i32, %c0_i32_0 : i32, i32
  }
  func.func @transform_2(%arg0: i32, %arg1: i32) -> (i32, i32) {
    %c0_i32 = arith.constant 0 : i32
    %c0_i32_0 = arith.constant 0 : i32
    %c0_i32_1 = arith.constant 0 : i32
    return %c0_i32, %c0_i32_0 : i32, i32
  }
  func.func @transform_3(%arg0: i32, %arg1: i32) -> (i32, i32, i32) {
    %c0_i32 = arith.constant 0 : i32
    %c0_i32_0 = arith.constant 0 : i32
    return %arg0, %c0_i32, %arg1 : i32, i32, i32
  }
}

</mosaic_0001>

<bundles_post_ra>
// kernel: tpu_custom_call.1
= control target key start
LH: loop header
LB: loop body
LE: loop exit
PB: predicated region body
PF: predicated region fallthrough
CT: control target
= control target key end

     0   :  { %8 = vsyncpa [#allocation3], 0  ;;  %s807_s0 = inlined_call_operand.hbm [shape: f32[2,4,256], index: 0, kind: input, shape index: {}]   ;;  %s808_s1 = inlined_call_operand.vmem [shape: f32[4,4], index: 1, kind: input, shape index: {}]   ;;  %s809_s2 = inlined_call_operand.vmem [shape: f32[4,1], index: 2, kind: input, shape index: {}]   ;;  %s810_s3 = inlined_call_operand.hbm [shape: f32[2,4,256], index: 3, kind: output, shape index: {}]  }
   0x1   :  { %10 = vsyncpa [#allocation3 + $0x1], 0 }
   0x2   :  { %11 = vsyncpa [#allocation4], 0 }
   0x3   :  { %13 = vsyncpa [#allocation4 + $0x1], 0  ;;  %s629_s12 = smov 0   ;;  %s631_s13 = smov 0  }
   0x4   :  { %s633_s14 = smov 0   ;;  %s635_s15 = smov 0  }
   0x5   :  { %s637_s16 = smov 0   ;;  %s639_s17 = smov 0  }
   0x6 LB: > { %s405_s18 = sadd.s32 4294967295, %s603_s17   ;;  %s406_s19 = sadd.s32 4294967294, %s603_s17   ;;  %s603_s17 = sphi %s639_s17, %s19_s17   ;;  %s599_s16 = sphi %s637_s16, %s826_s16   ;;  %s595_s15 = sphi %s635_s15, %s825_s15   ;;  %s591_s14 = sphi %s633_s14, %s824_s14   ;;  %s587_s13 = sphi %s631_s13, %s823_s13   ;;  %s583_s12 = sphi %s629_s12, %s822_s12  }
   0x7   : > { %s31_s20 = sadd.s32 1, %s599_s16  ;;  %s40_s21 = sadd.s32 1, %s591_s14 }
   0x8   : > { %p33_p0 = scmp.ge.s32.totalorder %s31_s20, 2  ;;  %p47_p1 = scmp.ne.s32.totalorder %s591_s14, %s587_s13 }
   0x9   : > { %p48_p2 = scmp.eq.s32.totalorder %s603_s17, 0  ;;  %p53_p3 = scmp.ne.s32.totalorder %s587_s13, %s583_s12 }
   0xa   : > { %s828_s20 = smov (%p33_p0, %s31_s20), 0  ;;  %p54_p5 = scmp.eq.s32.totalorder %s405_s18, 0 }
   0xb   : > { %p670_p4 = por %p48_p2, %p47_p1  ;;  %s35_s23 = ssub.s32 %s599_s16, %s828_s20 }
   0xc   : > { %p121_p6 = scmp.eq.s32.totalorder %s405_s18, 1  ;;  %p38_p7 = scmp.eq.s32.totalorder %s35_s23, 0 }
   0xd   : > { %p676_p8 = por %p54_p5, %p53_p3  ;;  %p127_p10 = scmp.eq.s32.totalorder %s406_s19, 1 }
   0xe   : > { %p680_p9 = por %p121_p6, %p47_p1  ;;  %p437_p13 = scmp.lt.s32.totalorder %s603_s17, 2 }
   0xf   : > { %s685_s26 = scalar_select %p38_p7, %s591_s14, %s40_s21  }
  0x10   : > { %s814_s25 = scalar_select %p680_p9, 1, 0 }
  0x11   : > { %p687_p11 = por %p127_p10, %p53_p3  ;;  %s153_s28 = sand.u32 1, %s591_s14  }
  0x12   : > { %s409_s29 = sshll.u32 %s153_s28, 3  ;;  %s423_s30 = sshll.u32 %s599_s16, 7 }
  0x13   : > { %s815_s27 = scalar_select %p687_p11, 1, 0 }
  0x14   : > { %s698_s6 = scalar_lea.hbm %s807_s0, %s423_s30  ;;  %s157_s7 = scalar_lea.vmem [#allocation2], %s409_s29 }
  0x15   : > { %s167_s8 = sshll.u32 %s157_s7, 4  ;;  %p704_p0 = pnand %p437_p13, %p670_p4  ;;  %s700_s8 = int_to_ptr.vmem [resolvable:$true] %s167_s8 }
  0x16   : > { %s154_s10 = scalar_lea.sflag [#allocation3], %s153_s28  ;;  %s491_s11 = scalar_lea.hbm %s698_s6, 128 }
  0x17   : > { %p492_p3 = scmp.ne.s32.totalorder %s698_s6, %s491_s11  ;;  %p493_p5 = pneg %p704_p0 }
  0x18   : > { %s496_s21 = scalar_lea.hbm %s807_s0, 256  ;;  %p497_p4 = scmp.lt.u32.totalorder %s698_s6, %s807_s0 }
  0x19   : > { %p494_p6 = pnand %p493_p5, %p492_p3  ;;  %p498_p10 = scmp.lt.u32.totalorder %s496_s21, %s491_s11 }
  0x1a   : > { %p500_p12 = scmp.lt.u32.totalorder %s491_s11, %s698_s6 }
  0x1b   : > { %p495_p7 = pneg %p494_p6  ;;  %p499_p13 = por %p498_p10, %p497_p4 }
  0x1d   : > { %p501_p1 = por %p500_p12, %p499_p13 }
  0x1f   : > { %p502_p2 = pnand %p501_p1, %p495_p7 }
  0x21   : > { %505 = shalt.err (!%p502_p2)
}
  0x22   : > { %s506_s28 = scalar_lea.vmem %s700_s8, 128  ;;  %s605_s29 = smov [#allocation2]  }
  0x23   : > { %p507_p3 = scmp.ne.s32.totalorder %s700_s8, %s506_s28  ;;  %s511_s30 = sshll.u32 %s605_s29, 4  ;;  %s512_s30 = int_to_ptr.vmem [resolvable:$false] %s511_s30 }
  0x24   : > { %s513_s4 = scalar_lea.vmem %s512_s30, 256  ;;  %p514_p9 = scmp.lt.s32.totalorder %s700_s8, %s512_s30 }
  0x25   : > { %p509_p6 = pnand %p507_p3, %p493_p5  ;;  %p515_p4 = scmp.lt.s32.totalorder %s513_s4, %s506_s28 }
  0x27   : > { %p510_p11 = pneg %p509_p6  ;;  %p516_p10 = por %p515_p4, %p514_p9 }
  0x29   : > { %p517_p12 = pnand %p516_p10, %p510_p11 }
  0x2b   : > { %520 = shalt.err (!%p517_p12)
}
  0x2c   : > { %432 = dma.hbm_to_vmem [thread:$0]  (!%p704_p0), %s698_s6, 128, %s700_s8, %s154_s10  }
  0x2d   : > { %p817_p1 = scmp.lt.s32.totalorder %s603_s17, 3  ;;  %p818_p2 = scmp.ge.s32.totalorder %s603_s17, 1 }
  0x2f   : > { %p173_p5 = pnand %p818_p2, %p817_p1 }
  0x30   : > { %s740_s5 = sand.u32 (!%p173_p5), 1, %s587_s13  }
  0x31   : > { %176 = sbr.rel (%p173_p5) target bundleno = 295 (0x127), region = 32  ;;  %s413_s7 = sshll.u32 (!%p173_p5), %s740_s5, 3 }
  0x32   : > { %s179_s11 = scalar_lea.sflag (!%p173_p5), [#allocation3], %s740_s5  ;;  %s182_s18 = scalar_lea.vmem (!%p173_p5), [#allocation2], %s413_s7 }
  0x38   : > { %574 = dma.done.wait (%p676_p8), %s179_s11, 128  }
  0x39   : > { %576 = vsyncadd (%p676_p8), %s179_s11, 4294967168  ;;  %v606_v0 = vmov 0.0   ;;  %v607_v1 = vmov 0   ;;  %v208_v2 = vld [vmem:[%s182_s18] sm:$0xff]  ;;  %vm221_vm0 = vcmask 1043456   ;;  %vm217_vm1 = vcmask 31744  }
  0x3a   : > { %290 = vmatprep.mubr.f32.mxu0 %v606_v0  ;;  %489 = vset.pattern.permute.xlu0 %v607_v1  ;;  %v209_v3 = vld [vmem:[%s809_s2] sm:$0xf]  ;;  %v216_v4 = vcombine.high %v208_v2, %v208_v2  ;;  %s424_s24 = sshll.u32 %s595_s15, 7  ;;  %s204_s19 = scalar_lea.vmem [#allocation5], %s413_s7 }
  0x3b   : > { %212 = vperm.xlu0 %489, %v209_v3   ;;  %v207_v5 = vld [vmem:[%s808_s1] sm:$0xf]  ;;  %s321_s21 = sshll.u32 %s204_s19, 4  ;;  %s758_s28 = scalar_lea.hbm %s810_s3, %s424_s24  ;;  %s760_s21 = int_to_ptr.vmem [resolvable:$true] %s321_s21 }
  0x3c   : > { %415 = vmatprep.subr.msk.mxu0 %vm221_vm0, %v216_v4  ;;  %s305_s29 = scalar_lea.sflag [#allocation4], %s740_s5  ;;  %s521_s30 = scalar_lea.vmem %s760_s21, 128 }
  0x3d   : > { %416 = vmatpush1.msk.msra.mxu0 %vm221_vm0, %v208_v2  ;;  %p522_p8 = scmp.ne.s32.totalorder %s760_s21, %s521_s30  ;;  %p819_p9 = scmp.ne.s32.totalorder %s814_s25, 0 }
  0x3e   : > { %417 = vmatmul.mubr.msk.f32.vlgmr.msra.gmra.mrb[0].mxu0 %vm217_vm1, %v207_v5  ;;  %s608_s15 = smov [#allocation5]  }
  0x3f   : > { %p523_p11 = pnand %p522_p8, %p819_p9  ;;  %s525_s4 = sshll.u32 %s608_s15, 4  ;;  %s526_s4 = int_to_ptr.vmem [resolvable:$false] %s525_s4 }
  0x40   : > { %s527_s7 = scalar_lea.vmem %s526_s4, 256  ;;  %p528_p7 = scmp.lt.s32.totalorder %s760_s21, %s526_s4 }
  0x41   : > { %p524_p0 = pneg %p523_p11  ;;  %p529_p13 = scmp.lt.s32.totalorder %s527_s7, %s521_s30 }
  0x43   : > { %p530_p3 = por %p529_p13, %p528_p7 }
  0x45   : > { %p531_p6 = pnand %p530_p3, %p524_p0 }
  0xba   : > { %v213_v6 = vpop.permute.xlu0 %212 }
 0x111   : > { %v292_v7 = vpop.f32.mrb[0].mxu0 }
 0x112   : > { %v293_v8 = vadd.f32 %v292_v7, %v213_v6  ;;  %v294_v9 = vpop.f32.mrb[1].mxu0 }
 0x113   : > { %v295_v10 = vadd.f32 %v294_v9, %v213_v6 }
 0x114   : > { %v297_v11 = vmax.f32 %v293_v8, 0.0 }
 0x115   : > { %v298_v12 = vmax.f32 %v295_v10, 0.0 }
 0x117   : > { %v301_v13 = vcombine.low %v297_v11, %v298_v12 }
 0x119   : > { %303 = vst [vmem:[%s204_s19] sm:$0xff] %v301_v13 }
 0x11a   : > { %534 = shalt.err (!%p531_p6)
}
 0x11b   : > { %s535_s5 = scalar_lea.hbm %s758_s28, 128  ;;  %s539_s6 = scalar_lea.hbm %s810_s3, 256 }
 0x11c   : > { %p536_p4 = scmp.ne.s32.totalorder %s758_s28, %s535_s5  ;;  %p540_p1 = scmp.lt.u32.totalorder %s758_s28, %s810_s3 }
 0x11d   : > { %p541_p2 = scmp.lt.u32.totalorder %s539_s6, %s535_s5  ;;  %p543_p8 = scmp.lt.u32.totalorder %s535_s5, %s758_s28 }
 0x11e   : > { %p537_p10 = pnand %p536_p4, %p819_p9 }
 0x11f   : > { %p542_p5 = por %p541_p2, %p540_p1 }
 0x120   : > { %p538_p12 = pneg %p537_p10 }
 0x121   : > { %p544_p11 = por %p543_p8, %p542_p5 }
 0x123   : > { %p545_p0 = pnand %p544_p11, %p538_p12 }
 0x125   : > { %548 = shalt.err (!%p545_p0)
}
 0x126   : > { %427 = dma.vmem_to_hbm [thread:$0]  (%p819_p9), %s760_s21, 128, %s758_s28, %s305_s29  }
 0x127 PF: > { %s333_s10 = sand.u32 1, %s583_s12   ;;  %p820_p7 = scmp.ne.s32.totalorder %s815_s27, 0 }
 0x128   : > { %p821_p13 = scmp.ge.s32.totalorder %s603_s17, 2  ;;  %s334_s24 = scalar_lea.sflag [#allocation4], %s333_s10 }
 0x12a   : > { %p434_p3 = pnand %p821_p13, %p820_p7 }
 0x12c   : > { %578 = dma.done.wait (!%p434_p3), %s334_s24, 128  }
 0x12d   : > { %580 = vsyncadd (!%p434_p3), %s334_s24, 4294967168  ;;  %s19_s17 = sadd.s32 1, %s603_s17   ;;  %s822_s12 = smov %s587_s13 }
 0x12e   : > { %p16_p6 = scmp.ge.s32.totalorder %s19_s17, 4   ;;  %s823_s13 = smov %s591_s14 }
 0x12f   : > { %s824_s14 = smov %s685_s26  ;;  %s825_s15 = smov %s599_s16 }
 0x130   : > { %s826_s16 = smov %s828_s20  ;;  %18 = sbr.rel (!%p16_p6) target bundleno = 6 (0x6), region = 77 }
 0x137   :  { %339 = vsyncpa [#allocation3], 1 }
 0x138   :  { %341 = vsyncpa [#allocation3 + $0x1], 1 }
 0x139   :  { %342 = vsyncpa [#allocation4], 1 }
 0x13a   :  { %344 = vsyncpa [#allocation4 + $0x1], 1 }

</bundles_post_ra>
